<compile_context>
chip_gen: v6e
topology: v6e:2x2x1
jax: 0.10.0
libtpu: 0.0.40
codegen_flags: <defaults>
</compile_context>

<pallas_src>
import functools

import jax
import jax.numpy as jnp
from jax import lax
from jax.experimental import pallas as pl
from jax.experimental.pallas import tpu as pltpu


def _round_up(x, m):
    return (x + m - 1) // m * m


def _gathering_kernel(q_ref, items_ref, items_sq_ref, o_ref, *, m_real):
    """One row-tile of queries vs. the full item memory.

    q_ref:        (tq, C)   queries (native dtype)
    items_ref:    (Mp, C)   memory items (same dtype as queries, Mp >= m_real)
    items_sq_ref: (Mp, 1)   precomputed ||item||^2 (f32)
    o_ref:        (1, tq)   per-row sum of squared errors (f32, lane-dense)
    """
    q = q_ref[...]                      # (tq, C)
    items = items_ref[...]              # (Mp, C)
    items_sq = items_sq_ref[...]        # (Mp, 1) f32

    mp, c = items.shape
    tq = q.shape[0]

    # score[m, t] = <items[m, :], q[t, :]>  == (q @ items.T).T
    # dot_general with contracting dims ((1,),(1,)) -> MXU, no materialized
    # transpose; queries land on the lane axis, so row-wise reductions below
    # come out lane-dense for free.  f32 accumulation.
    score = lax.dot_general(
        items, q, (((1,), (1,)), ((), ())),
        preferred_element_type=jnp.float32)             # (Mp, tq) f32

    m_iota_i = lax.broadcasted_iota(jnp.int32, (mp, tq), 0)
    m_iota = m_iota_i.astype(jnp.float32)
    if m_real != mp:
        # Padded memory rows must never win the argmax.
        score = jnp.where(m_iota_i < m_real, score, -jnp.inf)

    # softmax over the item axis is monotone -> argmax of raw scores is the
    # same as argmax of softmax(score).
    mx = jnp.max(score, axis=0, keepdims=True)           # (1, tq)
    # First-max tie-break (matches torch.topk k=1): smallest index hitting mx.
    idx = jnp.min(jnp.where(score == mx, m_iota, float(mp)),
                  axis=0, keepdims=True)                 # (1, tq)
    sel = m_iota == idx                                   # (Mp, tq)
    gathered_sq = jnp.sum(jnp.where(sel, items_sq, 0.0),
                          axis=0, keepdims=True)          # (1, tq)

    # ||q||^2 per row, produced lane-dense via a skinny MXU matmul
    # (ones(8, C) @ (q*q).T, keep row 0).  f32 for accuracy even if q is bf16.
    qf = q.astype(jnp.float32)
    ones_lhs = jnp.ones((8, c), jnp.float32)
    row_q_sq = lax.dot_general(
        ones_lhs, qf * qf, (((1,), (1,)), ((), ())),
        preferred_element_type=jnp.float32)[0:1, :]       # (1, tq)

    # ||q - items[idx]||^2 = ||q||^2 - 2*score[idx] + ||items[idx]||^2
    sse = row_q_sq - 2.0 * mx + gathered_sq
    o_ref[...] = jnp.maximum(sse, 0.0)


def _per_row_sse(q_flat, items, items_sq, m_real, tq):
    """Pallas-computed per-row SSE. Returns a (T_pad,) f32 vector."""
    t_pad, c = q_flat.shape
    mp = items.shape[0]
    num_tiles = t_pad // tq

    # VMEM budget: double-buffered query tile + items + items_sq + output.
    # Only raise the scoped limit when needed; stay well under v7x's 64 MiB.
    # TODO(synk): for very large item memories (Mp*C*4 approaching the VMEM
    # budget), tile M with a second ("arbitrary") grid axis and keep a running
    # max/argmax accumulator in VMEM scratch instead of loading all items.
    itemsize = q_flat.dtype.itemsize
    vmem_need = (2 * tq * c * itemsize + 2 * mp * c * itemsize
                 + 2 * mp * 4 + 2 * tq * 4) + (2 << 20)
    vmem_limit = min(max(vmem_need, 32 * 1024 * 1024), 48 * 1024 * 1024)

    kernel = functools.partial(_gathering_kernel, m_real=m_real)
    out = pl.pallas_call(
        kernel,
        out_shape=jax.ShapeDtypeStruct((1, t_pad), jnp.float32),
        grid_spec=pltpu.PrefetchScalarGridSpec(
            num_scalar_prefetch=0,
            grid=(num_tiles,),
            in_specs=[
                pl.BlockSpec((tq, c), lambda i: (i, 0)),   # query row-tile
                pl.BlockSpec((mp, c), lambda i: (0, 0)),   # full item memory
                pl.BlockSpec((mp, 1), lambda i: (0, 0)),   # precomputed ||item||^2
            ],
            out_specs=pl.BlockSpec((1, tq), lambda i: (0, i)),  # lane-dense SSE
        ),
        compiler_params=pltpu.CompilerParams(
            dimension_semantics=("parallel",),   # shards across v7x's 2 TCs
            vmem_limit_bytes=vmem_limit,
        ),
        cost_estimate=pl.CostEstimate(
            flops=2 * t_pad * mp * c + 2 * t_pad * 8 * c,
            transcendentals=0,
            bytes_accessed=(q_flat.size * itemsize + items.size * itemsize
                            + items_sq.size * 4 + t_pad * 4),
        ),
    )(q_flat, items, items_sq)
    return out[0]            # (T_pad,)


@functools.partial(jax.jit, static_argnames=("reduce", "block_rows"))
def gathering_loss(queries, items, reduce=True, block_rows=512):
    """JAX/Pallas equivalent of GatheringLoss.forward.

    queries: (N, L, C); items: (M, C)
    reduce=True  -> scalar mean over all T*C squared errors
    reduce=False -> (N, L) per-position sum of squared errors
    """
    n, l, c = queries.shape
    m = items.shape[0]
    t = n * l

    # Row tile: multiple of 128 (lane-dense output, low per-step overhead),
    # but don't over-pad tiny inputs.
    tq = min(_round_up(block_rows, 128), _round_up(t, 128))
    t_pad = _round_up(t, tq)
    mp = _round_up(m, 8)

    q_flat = queries.reshape(t, c)
    if t_pad != t:
        q_flat = jnp.pad(q_flat, ((0, t_pad - t), (0, 0)))

    items_c = items.astype(queries.dtype)
    items_sq = jnp.sum(items.astype(jnp.float32) ** 2, axis=1, keepdims=True)
    if mp != m:
        items_c = jnp.pad(items_c, ((0, mp - m), (0, 0)))
        items_sq = jnp.pad(items_sq, ((0, mp - m), (0, 0)))

    sse = _per_row_sse(q_flat, items_c, items_sq, m, tq)[:t]   # (T,)
    if reduce:
        return jnp.sum(sse) / (t * c)
    return sse.reshape(n, l)


def _reference(queries, items, reduce=True):
    """Plain-JAX reference mirroring the PyTorch module."""
    n, l, c = queries.shape
    q = queries.reshape(-1, c)
    score = jax.nn.softmax(q @ items.T, axis=1)
    idx = jnp.argmax(score, axis=1)
    gathered = items[idx]
    se = (q - gathered) ** 2
    if reduce:
        return jnp.mean(se)
    return jnp.sum(se, axis=-1).reshape(n, l)


if __name__ == "__main__":
    key = jax.random.PRNGKey(0)

    # Case 1: shapes consistent with the module forward: queries (N,L,C), items (M,C)
    n, l, c, m = 2, 8, 32, 16
    kq, ki, key = jax.random.split(key, 3)
    queries = jax.random.normal(kq, (n, l, c), dtype=jnp.float32)
    items = jax.random.normal(ki, (m, c), dtype=jnp.float32)

    out_reduced = jax.block_until_ready(gathering_loss(queries, items, reduce=True))
    out_full = jax.block_until_ready(gathering_loss(queries, items, reduce=False))
    assert out_full.shape == (n, l)
    assert jnp.allclose(out_reduced, _reference(queries, items, True), atol=1e-4, rtol=1e-4)
    assert jnp.allclose(out_full, _reference(queries, items, False), atol=1e-4, rtol=1e-4)

    # Case 2: ragged shapes exercising the T-padding and M-masking paths.
    n2, l2, c2, m2 = 3, 7, 32, 20
    kq2, ki2 = jax.random.split(key)
    queries2 = jax.random.normal(kq2, (n2, l2, c2), dtype=jnp.float32)
    items2 = jax.random.normal(ki2, (m2, c2), dtype=jnp.float32)

    out2_reduced = jax.block_until_ready(gathering_loss(queries2, items2, reduce=True))
    out2_full = jax.block_until_ready(gathering_loss(queries2, items2, reduce=False))
    assert out2_full.shape == (n2, l2)
    assert jnp.allclose(out2_reduced, _reference(queries2, items2, True), atol=1e-4, rtol=1e-4)
    assert jnp.allclose(out2_full, _reference(queries2, items2, False), atol=1e-4, rtol=1e-4)

    print("KERNEL_OK")
</pallas_src>

<mosaic_0001>
module attributes {stable_mosaic.version = 11 : i64} {
  func.func @_gathering_kernel(%arg0: i32, %arg1: memref<128x32xf32, #tpu.memory_space<vmem>>, %arg2: memref<16x32xf32, #tpu.memory_space<vmem>>, %arg3: memref<16x1xf32, #tpu.memory_space<vmem>>, %arg4: memref<1x128xf32, #tpu.memory_space<vmem>>) attributes {dimension_semantics = [#tpu.dimension_semantics<parallel>], iteration_bounds = array<i64: 1>, scalar_prefetch = 0 : i64, scratch_operands = 0 : i64, tpu.core_type = #tpu.core_type<tc>, window_params = [{transform_indices = @transform_0, window_bounds = array<i64: 128, 32>}, {pipeline_mode = #tpu.pipeline_mode<synchronous>, transform_indices = @transform_1, window_bounds = array<i64: 16, 32>}, {pipeline_mode = #tpu.pipeline_mode<synchronous>, transform_indices = @transform_2, window_bounds = array<i64: 16, 1>}, {transform_indices = @transform_3, window_bounds = array<i64: 1, 128>}]} {
    %c0 = arith.constant 0 : index
    %c0_0 = arith.constant 0 : index
    %0 = vector.load %arg1[%c0, %c0_0] : memref<128x32xf32, #tpu.memory_space<vmem>>, vector<128x32xf32>
    %c0_1 = arith.constant 0 : index
    %c0_2 = arith.constant 0 : index
    %1 = vector.load %arg2[%c0_1, %c0_2] : memref<16x32xf32, #tpu.memory_space<vmem>>, vector<16x32xf32>
    %c0_3 = arith.constant 0 : index
    %c0_4 = arith.constant 0 : index
    %2 = vector.load %arg3[%c0_3, %c0_4] : memref<16x1xf32, #tpu.memory_space<vmem>>, vector<16x1xf32>
    %cst = arith.constant dense<0.000000e+00> : vector<16x128xf32>
    %3 = tpu.matmul %1, %0, %cst {dimension_numbers = #tpu.dot_dimension_numbers<[1], [1], [0], [0], [0, 0, 1, 0], [], []>} : vector<16x32xf32>, vector<128x32xf32>, vector<16x128xf32> -> vector<16x128xf32>
    %4 = tpu.iota {dimensions = array<i32: 0>} : vector<16x128xi32>
    %5 = arith.sitofp %4 : vector<16x128xi32> to vector<16x128xf32>
    %cst_5 = arith.constant dense<0xFF800000> : vector<128xf32>
    %6 = vector.multi_reduction <maximumf>, %3, %cst_5 [0] : vector<16x128xf32> to vector<128xf32>
    %7 = vector.shape_cast %6 : vector<128xf32> to vector<1x128xf32>
    %8 = vector.broadcast %7 : vector<1x128xf32> to vector<16x128xf32>
    %9 = arith.cmpf oeq, %3, %8 : vector<16x128xf32>
    %cst_6 = arith.constant 1.600000e+01 : f32
    %10 = vector.broadcast %cst_6 : f32 to vector<16x128xf32>
    %11 = arith.select %9, %5, %10 : vector<16x128xi1>, vector<16x128xf32>
    %cst_7 = arith.constant dense<0x7F800000> : vector<128xf32>
    %12 = vector.multi_reduction <minimumf>, %11, %cst_7 [0] : vector<16x128xf32> to vector<128xf32>
    %13 = vector.shape_cast %12 : vector<128xf32> to vector<1x128xf32>
    %14 = vector.broadcast %13 : vector<1x128xf32> to vector<16x128xf32>
    %15 = arith.cmpf oeq, %5, %14 : vector<16x128xf32>
    %cst_8 = arith.constant 0.000000e+00 : f32
    %16 = vector.shape_cast %2 : vector<16x1xf32> to vector<16x1xf32>
    %17 = vector.broadcast %16 : vector<16x1xf32> to vector<16x128xf32>
    %18 = vector.broadcast %cst_8 : f32 to vector<16x128xf32>
    %19 = arith.select %15, %17, %18 : vector<16x128xi1>, vector<16x128xf32>
    %cst_9 = arith.constant dense<0.000000e+00> : vector<128xf32>
    %20 = vector.multi_reduction <add>, %19, %cst_9 [0] : vector<16x128xf32> to vector<128xf32>
    %21 = vector.shape_cast %20 : vector<128xf32> to vector<1x128xf32>
    %cst_10 = arith.constant 1.000000e+00 : f32
    %22 = vector.broadcast %cst_10 : f32 to vector<8x32xf32>
    %23 = arith.mulf %0, %0 : vector<128x32xf32>
    %cst_11 = arith.constant dense<0.000000e+00> : vector<8x128xf32>
    %24 = tpu.matmul %22, %23, %cst_11 {dimension_numbers = #tpu.dot_dimension_numbers<[1], [1], [0], [0], [0, 0, 1, 0], [], []>} : vector<8x32xf32>, vector<128x32xf32>, vector<8x128xf32> -> vector<8x128xf32>
    %25 = vector.extract_strided_slice %24 {offsets = [0, 0], sizes = [1, 128], strides = [1, 1]} : vector<8x128xf32> to vector<1x128xf32>
    %cst_12 = arith.constant 2.000000e+00 : f32
    %26 = vector.broadcast %cst_12 : f32 to vector<1x128xf32>
    %27 = arith.mulf %26, %7 : vector<1x128xf32>
    %28 = arith.subf %25, %27 : vector<1x128xf32>
    %29 = arith.addf %28, %21 : vector<1x128xf32>
    %cst_13 = arith.constant 0.000000e+00 : f32
    %30 = vector.broadcast %cst_13 : f32 to vector<1x128xf32>
    %31 = arith.maximumf %29, %30 : vector<1x128xf32>
    %c0_14 = arith.constant 0 : index
    %c0_15 = arith.constant 0 : index
    %32 = vector.load %arg4[%c0_14, %c0_15] : memref<1x128xf32, #tpu.memory_space<vmem>>, vector<1x128xf32>
    tpu.vector_store %arg4[%c0_14, %c0_15], %31 {strides = array<i32>} : memref<1x128xf32, #tpu.memory_space<vmem>>, vector<1x128xf32>,
    return
  }
  func.func @transform_0(%arg0: i32) -> (i32, i32) {
    %c0_i32 = arith.constant 0 : i32
    %c0_i32_0 = arith.constant 0 : i32
    return %arg0, %c0_i32 : i32, i32
  }
  func.func @transform_1(%arg0: i32) -> (i32, i32) {
    %c0_i32 = arith.constant 0 : i32
    %c0_i32_0 = arith.constant 0 : i32
    %c0_i32_1 = arith.constant 0 : i32
    return %c0_i32, %c0_i32_0 : i32, i32
  }
  func.func @transform_2(%arg0: i32) -> (i32, i32) {
    %c0_i32 = arith.constant 0 : i32
    %c0_i32_0 = arith.constant 0 : i32
    %c0_i32_1 = arith.constant 0 : i32
    return %c0_i32, %c0_i32_0 : i32, i32
  }
  func.func @transform_3(%arg0: i32) -> (i32, i32) {
    %c0_i32 = arith.constant 0 : i32
    %c0_i32_0 = arith.constant 0 : i32
    return %c0_i32, %arg0 : i32, i32
  }
}

</mosaic_0001>

<bundles_post_ra>
// kernel: gathering_loss.1
= control target key start
LH: loop header
LB: loop body
LE: loop exit
PB: predicated region body
PF: predicated region fallthrough
CT: control target
= control target key end

     0   :  { %vm34_vm0 = vcmask 261120   ;;  %v499_v2 = vmov 0.0   ;;  %vm500_vm1 = vmmov 0   ;;  %v501_v4 = vmov 0   ;;  %s654_s0 = inlined_call_operand.vmem [shape: f32[128,32], index: 0, kind: input, shape index: {}]   ;;  %s655_s1 = inlined_call_operand.vmem [shape: f32[16,32], index: 1, kind: input, shape index: {}]   ;;  %s656_s2 = inlined_call_operand.vmem [shape: f32[16,1], index: 2, kind: input, shape index: {}]   ;;  %s657_s3 = inlined_call_operand.vmem [shape: f32[1,128], index: 3, kind: output, shape index: {}]  }
   0x1   :  { %v29_v0 = vld [vmem:[%s654_s0 + $0x78] sm:$0xff]  ;;  %v28_v1 = vld [vmem:[%s654_s0 + $0x70] sm:$0xff]  ;;  %459 = vmatprep.subr.mxu1 %v499_v2  ;;  %491 = vmatprep.mubr.msk.f32.mxu1 %vm500_vm1, %v499_v2  ;;  %v27_v6 = vld [vmem:[%s654_s0 + $0x68] sm:$0xff]  ;;  %v502_v38 = vmov 1.0   ;;  %v164_v42 = vlaneseq }
   0x2   :  { %424 = vmatprep.subr.msk.mxu0 %vm34_vm0, %v29_v0  ;;  %v223_v3 = vmul.f32 %v29_v0, %v29_v0  ;;  %498 = vset.pattern.permute.xlu0 %v501_v4  ;;  %v222_v5 = vmul.f32 %v28_v1, %v28_v1  ;;  %v30_v7 = vld [vmem:[%s655_s1] sm:$0xff]  ;;  %v221_v9 = vmul.f32 %v27_v6, %v27_v6  ;;  %v33_v11 = vld [vmem:[%s656_s2 + $0x8] sm:$0xff]  ;;  %v25_v13 = vld [vmem:[%s654_s0 + $0x58] sm:$0xff] }
   0x3   :  { %425 = vmatpush3.xpose.msk.msra.mxu0 %vm34_vm0, %v29_v0  ;;  %456 = vmatprep.mubr.msk.f32.mxu0 %vm34_vm0, %v30_v7  ;;  %v32_v8 = vld [vmem:[%s656_s2] sm:$0xff]  ;;  %v219_v14 = vmul.f32 %v25_v13, %v25_v13  ;;  %v24_v15 = vld [vmem:[%s654_s0 + $0x50] sm:$0xff]  ;;  %v23_v17 = vld [vmem:[%s654_s0 + $0x48] sm:$0xff]  ;;  %v165_v46 = vshrl.u32 %v164_v42, 7 }
   0x4   :  { %426 = vmatprep.subr.msk.mxu0 %vm34_vm0, %v28_v1  ;;  %460 = vmatpush3.xpose.msk.msra.mxu1 %vm34_vm0, %v223_v3  ;;  %v26_v10 = vld [vmem:[%s654_s0 + $0x60] sm:$0xff]  ;;  %v218_v16 = vmul.f32 %v24_v15, %v24_v15  ;;  %v217_v18 = vmul.f32 %v23_v17, %v23_v17  ;;  %v21_v21 = vld [vmem:[%s654_s0 + $0x38] sm:$0xff]  ;;  %v20_v23 = vld [vmem:[%s654_s0 + $0x30] sm:$0xff] }
   0x5   :  { %461 = vmatprep.subr.mxu1 %v499_v2  ;;  %191 = vperm.xlu0 %498, %v32_v8   ;;  %v220_v12 = vmul.f32 %v26_v10, %v26_v10  ;;  %v22_v19 = vld [vmem:[%s654_s0 + $0x40] sm:$0xff]  ;;  %v215_v22 = vmul.f32 %v21_v21, %v21_v21  ;;  %v214_v24 = vmul.f32 %v20_v23, %v20_v23  ;;  %v19_v25 = vld [vmem:[%s654_s0 + $0x28] sm:$0xff]  ;;  %v17_v29 = vld [vmem:[%s654_s0 + $0x18] sm:$0xff]  ;;  %v166_v49 = vadd.s32 8, %v165_v46 }
   0x6   :  { %v216_v20 = vmul.f32 %v22_v19, %v22_v19  ;;  %v213_v26 = vmul.f32 %v19_v25, %v19_v25  ;;  %v18_v27 = vld [vmem:[%s654_s0 + $0x20] sm:$0xff]  ;;  %v211_v30 = vmul.f32 %v17_v29, %v17_v29  ;;  %v16_v31 = vld [vmem:[%s654_s0 + $0x10] sm:$0xff]  ;;  %v15_v33 = vld [vmem:[%s654_s0 + $0x8] sm:$0xff]  ;;  %v167_v52 = vcvt.s32.f32 %v165_v46 }
   0x7   :  { %427 = vmatpush3.xpose.msk.msra.mxu0 %vm34_vm0, %v28_v1  ;;  %v212_v28 = vmul.f32 %v18_v27, %v18_v27  ;;  %v210_v32 = vmul.f32 %v16_v31, %v16_v31  ;;  %v209_v34 = vmul.f32 %v15_v33, %v15_v33  ;;  %v14_v35 = vld [vmem:[%s654_s0] sm:$0xff]  ;;  %v31_v37 = vld [vmem:[%s655_s1 + $0x8] sm:$0xff]  ;;  %v168_v53 = vcvt.s32.f32 %v166_v49 }
   0x8   :  { %428 = vmatprep.subr.msk.mxu0 %vm34_vm0, %v27_v6  ;;  %462 = vmatpush3.xpose.msk.msra.mxu1 %vm34_vm0, %v222_v5  ;;  %v208_v36 = vmul.f32 %v14_v35, %v14_v35 }
   0x9   :  { %463 = vmatprep.subr.mxu1 %v499_v2  ;;  %196 = vperm.xlu0 %498, %v33_v11  }
   0xb   :  { %429 = vmatpush3.xpose.msk.msra.mxu0 %vm34_vm0, %v27_v6 }
   0xc   :  { %430 = vmatprep.subr.msk.mxu0 %vm34_vm0, %v26_v10  ;;  %464 = vmatpush3.xpose.msk.msra.mxu1 %vm34_vm0, %v221_v9 }
   0xd   :  { %465 = vmatprep.subr.mxu1 %v499_v2 }
   0xf   :  { %431 = vmatpush3.xpose.msk.msra.mxu0 %vm34_vm0, %v26_v10 }
  0x10   :  { %432 = vmatprep.subr.msk.mxu0 %vm34_vm0, %v25_v13  ;;  %466 = vmatpush3.xpose.msk.msra.mxu1 %vm34_vm0, %v220_v12 }
  0x11   :  { %467 = vmatprep.subr.mxu1 %v499_v2 }
  0x13   :  { %433 = vmatpush3.xpose.msk.msra.mxu0 %vm34_vm0, %v25_v13 }
  0x14   :  { %434 = vmatprep.subr.msk.mxu0 %vm34_vm0, %v24_v15  ;;  %468 = vmatpush3.xpose.msk.msra.mxu1 %vm34_vm0, %v219_v14 }
  0x15   :  { %469 = vmatprep.subr.mxu1 %v499_v2 }
  0x17   :  { %435 = vmatpush3.xpose.msk.msra.mxu0 %vm34_vm0, %v24_v15 }
  0x18   :  { %436 = vmatprep.subr.msk.mxu0 %vm34_vm0, %v23_v17  ;;  %470 = vmatpush3.xpose.msk.msra.mxu1 %vm34_vm0, %v218_v16 }
  0x19   :  { %471 = vmatprep.subr.mxu1 %v499_v2 }
  0x1b   :  { %437 = vmatpush3.xpose.msk.msra.mxu0 %vm34_vm0, %v23_v17 }
  0x1c   :  { %438 = vmatprep.subr.msk.mxu0 %vm34_vm0, %v22_v19  ;;  %472 = vmatpush3.xpose.msk.msra.mxu1 %vm34_vm0, %v217_v18 }
  0x1d   :  { %473 = vmatprep.subr.mxu1 %v499_v2 }
  0x1f   :  { %439 = vmatpush3.xpose.msk.msra.mxu0 %vm34_vm0, %v22_v19 }
  0x20   :  { %440 = vmatprep.subr.msk.mxu0 %vm34_vm0, %v21_v21  ;;  %474 = vmatpush3.xpose.msk.msra.mxu1 %vm34_vm0, %v216_v20 }
  0x21   :  { %475 = vmatprep.subr.mxu1 %v499_v2 }
  0x23   :  { %441 = vmatpush3.xpose.msk.msra.mxu0 %vm34_vm0, %v21_v21 }
  0x24   :  { %442 = vmatprep.subr.msk.mxu0 %vm34_vm0, %v20_v23  ;;  %476 = vmatpush3.xpose.msk.msra.mxu1 %vm34_vm0, %v215_v22 }
  0x25   :  { %477 = vmatprep.subr.mxu1 %v499_v2 }
  0x27   :  { %443 = vmatpush3.xpose.msk.msra.mxu0 %vm34_vm0, %v20_v23 }
  0x28   :  { %444 = vmatprep.subr.msk.mxu0 %vm34_vm0, %v19_v25  ;;  %478 = vmatpush3.xpose.msk.msra.mxu1 %vm34_vm0, %v214_v24 }
  0x29   :  { %479 = vmatprep.subr.mxu1 %v499_v2 }
  0x2b   :  { %445 = vmatpush3.xpose.msk.msra.mxu0 %vm34_vm0, %v19_v25 }
  0x2c   :  { %446 = vmatprep.subr.msk.mxu0 %vm34_vm0, %v18_v27  ;;  %480 = vmatpush3.xpose.msk.msra.mxu1 %vm34_vm0, %v213_v26 }
  0x2d   :  { %481 = vmatprep.subr.mxu1 %v499_v2 }
  0x2f   :  { %447 = vmatpush3.xpose.msk.msra.mxu0 %vm34_vm0, %v18_v27 }
  0x30   :  { %448 = vmatprep.subr.msk.mxu0 %vm34_vm0, %v17_v29  ;;  %482 = vmatpush3.xpose.msk.msra.mxu1 %vm34_vm0, %v212_v28 }
  0x31   :  { %483 = vmatprep.subr.mxu1 %v499_v2 }
  0x33   :  { %449 = vmatpush3.xpose.msk.msra.mxu0 %vm34_vm0, %v17_v29 }
  0x34   :  { %450 = vmatprep.subr.msk.mxu0 %vm34_vm0, %v16_v31  ;;  %484 = vmatpush3.xpose.msk.msra.mxu1 %vm34_vm0, %v211_v30 }
  0x35   :  { %485 = vmatprep.subr.mxu1 %v499_v2 }
  0x37   :  { %451 = vmatpush3.xpose.msk.msra.mxu0 %vm34_vm0, %v16_v31 }
  0x38   :  { %452 = vmatprep.subr.msk.mxu0 %vm34_vm0, %v15_v33  ;;  %486 = vmatpush3.xpose.msk.msra.mxu1 %vm34_vm0, %v210_v32 }
  0x39   :  { %487 = vmatprep.subr.mxu1 %v499_v2 }
  0x3b   :  { %453 = vmatpush3.xpose.msk.msra.mxu0 %vm34_vm0, %v15_v33 }
  0x3c   :  { %454 = vmatprep.subr.msk.mxu0 %vm34_vm0, %v14_v35  ;;  %488 = vmatpush3.xpose.msk.msra.mxu1 %vm34_vm0, %v209_v34 }
  0x3d   :  { %489 = vmatprep.subr.mxu1 %v499_v2 }
  0x3f   :  { %455 = vmatpush3.xpose.msk.msra.mxu0 %vm34_vm0, %v14_v35 }
  0x40   :  { %490 = vmatpush3.xpose.msk.msra.mxu1 %vm34_vm0, %v208_v36 }
  0x42   :  { %457 = vmatmul.mubr.msk.f32.vlgmr.msra.gmra.mxu0 %vm34_vm0, %v31_v37 }
  0x43   :  { %492 = vmatmul.mubr.msk.f32.vlgmr.msra.gmra.mxu1 %vm34_vm0, %v502_v38 }
  0x80   :  { %v192_v61 = vpop.permute.xlu0 %191 }
  0x84   :  { %v197_v1 = vpop.permute.xlu0 %196 }
 0x102   :  { %v458_v39 = vpop.f32.mrf.mxu0 }
 0x103   :  { %v341_v40 = vpop.f32.mrf.mxu1 }
 0x104   :  { %v155_v41 = vpop.f32.mrf.mxu0 }
 0x105   :  { %v169_v43 = vmax.f32 %v155_v41, %v458_v39  ;;  %v493_v44 = vpop.f32.mrf.mxu1 }
 0x107   :  { %v170_v45 = vrot.slane %v169_v43, 4 }
 0x109   :  { %v171_v47 = vmax.f32 %v169_v43, %v170_v45 }
 0x10b   :  { %v172_v48 = vrot.slane %v171_v47, 2 }
 0x10d   :  { %v173_v50 = vmax.f32 %v171_v47, %v172_v48 }
 0x10f   :  { %v174_v51 = vrot.slane %v173_v50, 1 }
 0x111   :  { %v175_v54 = vmax.f32 %v173_v50, %v174_v51 }
 0x113   :  { %vm176_vm2 = vcmp.eq.f32.partialorder %v155_v41, %v175_v54  ;;  %vm177_vm3 = vcmp.eq.f32.partialorder %v458_v39, %v175_v54  ;;  %v345_v8 = vmul.f32 2.0, %v175_v54 }
 0x114   :  { %v178_v55 = vsel %vm176_vm2, %v167_v52, 16.0  ;;  %v179_v56 = vsel %vm177_vm3, %v168_v53, 16.0 }
 0x115   :  { %v180_v57 = vmin.f32 %v178_v55, %v179_v56  ;;  %v346_v11 = vsub.f32 %v341_v40, %v345_v8 }
 0x117   :  { %v181_v58 = vrot.slane %v180_v57, 4 }
 0x119   :  { %v182_v59 = vmin.f32 %v180_v57, %v181_v58 }
 0x11b   :  { %v183_v60 = vrot.slane %v182_v59, 2 }
 0x11d   :  { %v184_v62 = vmin.f32 %v182_v59, %v183_v60 }
 0x11f   :  { %v185_v63 = vrot.slane %v184_v62, 1 }
 0x121   :  { %v186_v0 = vmin.f32 %v184_v62, %v185_v63 }
 0x123   :  { %vm187_vm4 = vcmp.eq.f32.partialorder %v167_v52, %v186_v0  ;;  %vm188_vm5 = vcmp.eq.f32.partialorder %v168_v53, %v186_v0 }
 0x124   :  { %v199_v2 = vsel %vm187_vm4, %v192_v61, 0.0  ;;  %v200_v3 = vsel %vm188_vm5, %v197_v1, 0.0 }
 0x125   :  { %v201_v4 = vadd.f32 %v200_v3, %v199_v2 }
 0x127   :  { %v202_v5 = vrot.slane %v201_v4, 4 }
 0x129   :  { %v203_v6 = vadd.f32 %v202_v5, %v201_v4 }
 0x12b   :  { %v204_v7 = vrot.slane %v203_v6, 2 }
 0x12d   :  { %v205_v9 = vadd.f32 %v204_v7, %v203_v6 }
 0x12f   :  { %v206_v10 = vrot.slane %v205_v9, 1 }
 0x131   :  { %v207_v12 = vadd.f32 %v206_v10, %v205_v9 }
 0x133   :  { %v347_v13 = vadd.f32 %v346_v11, %v207_v12 }
 0x135   :  { %v348_v14 = vmax.f32 %v347_v13, 0.0 }
 0x137   :  { %349 = vst [vmem:[%s657_s3] sm:$0x1] %v348_v14 }

</bundles_post_ra>
